<compile_context>
chip_gen: v5e
topology: v5e:2x2
jax: 0.10.0
libtpu: 0.0.40
codegen_flags: <defaults>
</compile_context>

<pallas_src>
import functools

import jax
import jax.numpy as jnp
from jax import lax
from jax.experimental import pallas as pl
from jax.experimental.pallas import tpu as pltpu


def _round_up(x: int, m: int) -> int:
    return ((x + m - 1) // m) * m


def tied_embedding_kernel(t_ref, w_ref, b_ref, o_ref, acc_ref):
    # t_ref  : (tm, tk)  activation tile
    # w_ref  : (tn, tk)  weight tile (rows of W = output features)
    # b_ref  : (1, tn)   bias tile (f32)
    # o_ref  : (tm, tn)  output tile
    # acc_ref: (tm, tn)  f32 accumulator, resident across the K axis
    k = pl.program_id(2)

    @pl.when(k == 0)
    def _():
        acc_ref[...] = jnp.zeros_like(acc_ref)

    # Contract the last dim of both operands -> MXU consumes W rows directly,
    # no explicit transpose materialized.
    acc_ref[...] += lax.dot_general(
        t_ref[...],
        w_ref[...],
        dimension_numbers=(((1,), (1,)), ((), ())),
        preferred_element_type=jnp.float32,
    )

    @pl.when(k == pl.num_programs(2) - 1)
    def _():
        o_ref[...] = (acc_ref[...] + b_ref[...]).astype(o_ref.dtype)


def tied_embedding(t, weights, bias, *, tm=256, tn=256, tk=512):
    """out[..., v] = sum_h t[..., h] * weights[v, h] + bias[v]  (F.linear)."""
    *lead, H = t.shape
    V, Hw = weights.shape
    assert H == Hw, "hidden dims must match"
    assert bias.shape == (V,), "bias must be (vocab,)"

    t2d = t.reshape(-1, H)
    M = t2d.shape[0]

    # Clamp tiles to the (8,128)-aligned problem size, keep MXU alignment.
    tm_eff = _round_up(min(tm, _round_up(M, 8)), 8)
    tn_eff = _round_up(min(tn, _round_up(V, 128)), 128)
    tk_eff = _round_up(min(tk, _round_up(H, 128)), 128)

    # Pad so every dim divides its tile (zero padding is exact for a matmul).
    M_p = _round_up(M, tm_eff)
    V_p = _round_up(V, tn_eff)
    H_p = _round_up(H, tk_eff)

    if (M_p, H_p) != (M, H):
        t2d = jnp.pad(t2d, ((0, M_p - M), (0, H_p - H)))
    w2d = weights
    if (V_p, H_p) != (V, H):
        w2d = jnp.pad(w2d, ((0, V_p - V), (0, H_p - H)))
    b2d = bias.astype(jnp.float32)
    if V_p != V:
        b2d = jnp.pad(b2d, ((0, V_p - V),))
    b2d = b2d.reshape(1, V_p)

    grid = (M_p // tm_eff, V_p // tn_eff, H_p // tk_eff)

    in_bytes = jnp.dtype(t.dtype).itemsize
    w_bytes = jnp.dtype(weights.dtype).itemsize
    out_bytes = in_bytes

    # VMEM budget: double-buffered inputs + f32 accumulator + double-buffered
    # output, with headroom; capped so it also fits v7x's 64 MiB physical VMEM.
    vmem_est = (
        2 * (tm_eff * tk_eff * in_bytes + tn_eff * tk_eff * w_bytes + tn_eff * 4)
        + tm_eff * tn_eff * 4
        + 2 * tm_eff * tn_eff * out_bytes
    )
    vmem_limit = min(max(2 * vmem_est, 16 * 1024 * 1024), 48 * 1024 * 1024)

    cost = pl.CostEstimate(
        flops=2 * M * V * H,
        transcendentals=0,
        bytes_accessed=(
            M * H * in_bytes + V * H * w_bytes + V * 4 + M * V * out_bytes
        ),
    )

    out2d = pl.pallas_call(
        tied_embedding_kernel,
        out_shape=jax.ShapeDtypeStruct((M_p, V_p), t.dtype),
        grid_spec=pltpu.PrefetchScalarGridSpec(
            num_scalar_prefetch=0,
            grid=grid,
            in_specs=[
                pl.BlockSpec((tm_eff, tk_eff), lambda i, j, k: (i, k)),  # acts
                pl.BlockSpec((tn_eff, tk_eff), lambda i, j, k: (j, k)),  # W rows
                pl.BlockSpec((1, tn_eff), lambda i, j, k: (0, j)),       # bias
            ],
            out_specs=pl.BlockSpec((tm_eff, tn_eff), lambda i, j, k: (i, j)),
            scratch_shapes=[pltpu.VMEM((tm_eff, tn_eff), jnp.float32)],
        ),
        compiler_params=pltpu.CompilerParams(
            dimension_semantics=("parallel", "parallel", "arbitrary"),
            vmem_limit_bytes=vmem_limit,
        ),
        cost_estimate=cost,
    )(t2d, w2d, b2d)

    return out2d[:M, :V].reshape(*lead, V)


if __name__ == "__main__":
    # Deterministic synthetic parameters (TiedEmbedding.__init__ semantics:
    # `weights` comes from outside, bias is zeros of shape (vocab,)).
    batch, seq, hidden, vocab = 2, 8, 32, 256

    key = jax.random.PRNGKey(0)
    k_w, k_t = jax.random.split(key)
    weights = jax.random.normal(k_w, (vocab, hidden), dtype=jnp.float32) * 0.02
    bias = jnp.zeros((vocab,), dtype=jnp.float32)

    t = jax.random.normal(k_t, (batch, seq, hidden), dtype=jnp.float32)

    fwd = jax.jit(functools.partial(tied_embedding))
    out = fwd(t, weights, bias)
    out = jax.block_until_ready(out)

    # sanity check against plain-JAX reference of F.linear
    ref = jnp.einsum("bsh,vh->bsv", t, weights) + bias
    assert out.shape == (batch, seq, vocab)
    assert jnp.allclose(out, ref, atol=1e-4, rtol=1e-4)

    print("KERNEL_OK")
</pallas_src>

<mosaic_0001>
module attributes {stable_mosaic.version = 11 : i64} {
  func.func @tied_embedding_kernel(%arg0: i32, %arg1: i32, %arg2: i32, %arg3: memref<16x128xf32, #tpu.memory_space<vmem>>, %arg4: memref<256x128xf32, #tpu.memory_space<vmem>>, %arg5: memref<1x256xf32, #tpu.memory_space<vmem>>, %arg6: memref<16x256xf32, #tpu.memory_space<vmem>>, %arg7: memref<16x256xf32, #tpu.memory_space<vmem>>) attributes {dimension_semantics = [#tpu.dimension_semantics<parallel>, #tpu.dimension_semantics<parallel>, #tpu.dimension_semantics<arbitrary>], iteration_bounds = array<i64: 1, 1, 1>, scalar_prefetch = 0 : i64, scratch_operands = 1 : i64, tpu.core_type = #tpu.core_type<tc>, window_params = [{transform_indices = @transform_0, window_bounds = array<i64: 16, 128>}, {transform_indices = @transform_1, window_bounds = array<i64: 256, 128>}, {transform_indices = @transform_2, window_bounds = array<i64: 1, 256>}, {transform_indices = @transform_3, window_bounds = array<i64: 16, 256>}]} {
    %c0_i32 = arith.constant 0 : i32
    %0 = arith.cmpi eq, %arg2, %c0_i32 : i32
    %1 = arith.extui %0 : i1 to i32
    %c0_i32_0 = arith.constant 0 : i32
    %2 = arith.cmpi ne, %1, %c0_i32_0 : i32
    scf.if %2 {
      %cst_10 = arith.constant 0.000000e+00 : f32
      %12 = vector.broadcast %cst_10 : f32 to vector<16x256xf32>
      %c0_11 = arith.constant 0 : index
      %c0_12 = arith.constant 0 : index
      %13 = vector.load %arg7[%c0_11, %c0_12] : memref<16x256xf32, #tpu.memory_space<vmem>>, vector<16x256xf32>
      tpu.vector_store %arg7[%c0_11, %c0_12], %12 {strides = array<i32>} : memref<16x256xf32, #tpu.memory_space<vmem>>, vector<16x256xf32>,
    } else {
    }
    %c0 = arith.constant 0 : index
    %c0_1 = arith.constant 0 : index
    %3 = vector.load %arg7[%c0, %c0_1] : memref<16x256xf32, #tpu.memory_space<vmem>>, vector<16x256xf32>
    %c0_2 = arith.constant 0 : index
    %c0_3 = arith.constant 0 : index
    %4 = vector.load %arg3[%c0_2, %c0_3] : memref<16x128xf32, #tpu.memory_space<vmem>>, vector<16x128xf32>
    %c0_4 = arith.constant 0 : index
    %c0_5 = arith.constant 0 : index
    %5 = vector.load %arg4[%c0_4, %c0_5] : memref<256x128xf32, #tpu.memory_space<vmem>>, vector<256x128xf32>
    %cst = arith.constant dense<0.000000e+00> : vector<16x256xf32>
    %6 = tpu.matmul %4, %5, %cst {dimension_numbers = #tpu.dot_dimension_numbers<[1], [1], [0], [0], [0, 0, 1, 0], [], []>} : vector<16x128xf32>, vector<256x128xf32>, vector<16x256xf32> -> vector<16x256xf32>
    %7 = arith.addf %3, %6 : vector<16x256xf32>
    %c0_6 = arith.constant 0 : index
    %c0_7 = arith.constant 0 : index
    %8 = vector.load %arg7[%c0_6, %c0_7] : memref<16x256xf32, #tpu.memory_space<vmem>>, vector<16x256xf32>
    tpu.vector_store %arg7[%c0_6, %c0_7], %7 {strides = array<i32>} : memref<16x256xf32, #tpu.memory_space<vmem>>, vector<16x256xf32>,
    %c0_i32_8 = arith.constant 0 : i32
    %9 = arith.cmpi eq, %arg2, %c0_i32_8 : i32
    %10 = arith.extui %9 : i1 to i32
    %c0_i32_9 = arith.constant 0 : i32
    %11 = arith.cmpi ne, %10, %c0_i32_9 : i32
    scf.if %11 {
      %c0_10 = arith.constant 0 : index
      %c0_11 = arith.constant 0 : index
      %12 = vector.load %arg7[%c0_10, %c0_11] : memref<16x256xf32, #tpu.memory_space<vmem>>, vector<16x256xf32>
      %c0_12 = arith.constant 0 : index
      %c0_13 = arith.constant 0 : index
      %13 = vector.load %arg5[%c0_12, %c0_13] : memref<1x256xf32, #tpu.memory_space<vmem>>, vector<1x256xf32>
      %14 = vector.broadcast %13 : vector<1x256xf32> to vector<16x256xf32>
      %15 = arith.addf %12, %14 : vector<16x256xf32>
      %c0_14 = arith.constant 0 : index
      %c0_15 = arith.constant 0 : index
      %16 = vector.load %arg6[%c0_14, %c0_15] : memref<16x256xf32, #tpu.memory_space<vmem>>, vector<16x256xf32>
      tpu.vector_store %arg6[%c0_14, %c0_15], %15 {strides = array<i32>} : memref<16x256xf32, #tpu.memory_space<vmem>>, vector<16x256xf32>,
    } else {
    }
    return
  }
  func.func @transform_0(%arg0: i32, %arg1: i32, %arg2: i32) -> (i32, i32) {
    %c0_i32 = arith.constant 0 : i32
    return %arg0, %arg2 : i32, i32
  }
  func.func @transform_1(%arg0: i32, %arg1: i32, %arg2: i32) -> (i32, i32) {
    %c0_i32 = arith.constant 0 : i32
    return %arg1, %arg2 : i32, i32
  }
  func.func @transform_2(%arg0: i32, %arg1: i32, %arg2: i32) -> (i32, i32) {
    %c0_i32 = arith.constant 0 : i32
    %c0_i32_0 = arith.constant 0 : i32
    return %c0_i32, %arg1 : i32, i32
  }
  func.func @transform_3(%arg0: i32, %arg1: i32, %arg2: i32) -> (i32, i32) {
    %c0_i32 = arith.constant 0 : i32
    return %arg0, %arg1 : i32, i32
  }
}

</mosaic_0001>

<bundles_post_ra>
// kernel: tied_embedding.1
= control target key start
LH: loop header
LB: loop body
LE: loop exit
PB: predicated region body
PF: predicated region fallthrough
CT: control target
= control target key end

     0   :  { %s346_s0 = inlined_call_operand.vmem [shape: f32[16,128], index: 0, kind: input, shape index: {}]   ;;  %s347_s1 = inlined_call_operand.vmem [shape: f32[256,128], index: 1, kind: input, shape index: {}]   ;;  %s348_s2 = inlined_call_operand.vmem [shape: f32[1,256], index: 2, kind: input, shape index: {}]   ;;  %s349_s3 = inlined_call_operand.hbm [shape: f32[16,256], index: 3, kind: output, shape index: {}]  }
   0x1   :  { %v44_v0 = vld [vmem:[%s347_s1 + $0x78] sm:$0xff]  ;;  %v43_v2 = vld [vmem:[%s347_s1 + $0x70] sm:$0xff]  ;;  %v42_v4 = vld [vmem:[%s347_s1 + $0x68] sm:$0xff] }
   0x2   :  { %v60_v1 = vld [vmem:[%s347_s1 + $0xf8] sm:$0xff]  ;;  %154 = vmatpush.xpose.msra.mxu2 %v44_v0  ;;  %v59_v3 = vld [vmem:[%s347_s1 + $0xf0] sm:$0xff]  ;;  %61 = vmatpush.xpose.msra.mxu0 %v44_v0  ;;  %v58_v5 = vld [vmem:[%s347_s1 + $0xe8] sm:$0xff] }
   0x3   :  { %170 = vmatpush.xpose.msra.mxu3 %v60_v1  ;;  %84 = vmatpush.xpose.msra.mxu1 %v60_v1 }
   0x6   :  { %155 = vmatpush.xpose.msra.mxu2 %v43_v2  ;;  %62 = vmatpush.xpose.msra.mxu0 %v43_v2 }
   0x7   :  { %171 = vmatpush.xpose.msra.mxu3 %v59_v3  ;;  %85 = vmatpush.xpose.msra.mxu1 %v59_v3 }
   0x8   :  { %8 = vsyncpa [#allocation4], 0  ;;  %v41_v6 = vld [vmem:[%s347_s1 + $0x60] sm:$0xff]  ;;  %v40_v8 = vld [vmem:[%s347_s1 + $0x58] sm:$0xff]  ;;  %s215_s27 = smov [#allocation3]   ;;  %s217_s4 = smov 16  }
   0x9   :  { %v57_v7 = vld [vmem:[%s347_s1 + $0xe0] sm:$0xff]  ;;  %v56_v9 = vld [vmem:[%s347_s1 + $0xd8] sm:$0xff]  ;;  %v39_v10 = vld [vmem:[%s347_s1 + $0x50] sm:$0xff]  ;;  %s140_s28 = sshll.u32 %s215_s27, 4  ;;  %s141_s28 = int_to_ptr.vmem [resolvable:$true] %s140_s28 }
   0xa   :  { %156 = vmatpush.xpose.msra.mxu2 %v42_v4  ;;  %63 = vmatpush.xpose.msra.mxu0 %v42_v4  ;;  %v55_v11 = vld [vmem:[%s347_s1 + $0xd0] sm:$0xff]  ;;  %v38_v12 = vld [vmem:[%s347_s1 + $0x48] sm:$0xff]  ;;  %v37_v14 = vld [vmem:[%s347_s1 + $0x40] sm:$0xff] }
   0xb   :  { %172 = vmatpush.xpose.msra.mxu3 %v58_v5  ;;  %86 = vmatpush.xpose.msra.mxu1 %v58_v5  ;;  %v54_v13 = vld [vmem:[%s347_s1 + $0xc8] sm:$0xff]  ;;  %v53_v15 = vld [vmem:[%s347_s1 + $0xc0] sm:$0xff]  ;;  %v36_v16 = vld [vmem:[%s347_s1 + $0x38] sm:$0xff] }
   0xc   :  { %v52_v17 = vld [vmem:[%s347_s1 + $0xb8] sm:$0xff]  ;;  %v35_v18 = vld [vmem:[%s347_s1 + $0x30] sm:$0xff]  ;;  %v34_v20 = vld [vmem:[%s347_s1 + $0x28] sm:$0xff] }
   0xd   :  { %v51_v19 = vld [vmem:[%s347_s1 + $0xb0] sm:$0xff]  ;;  %v50_v21 = vld [vmem:[%s347_s1 + $0xa8] sm:$0xff]  ;;  %v33_v22 = vld [vmem:[%s347_s1 + $0x20] sm:$0xff] }
   0xe   :  { %157 = vmatpush.xpose.msra.mxu2 %v41_v6  ;;  %64 = vmatpush.xpose.msra.mxu0 %v41_v6  ;;  %v49_v23 = vld [vmem:[%s347_s1 + $0xa0] sm:$0xff]  ;;  %v32_v24 = vld [vmem:[%s347_s1 + $0x18] sm:$0xff]  ;;  %v31_v26 = vld [vmem:[%s347_s1 + $0x10] sm:$0xff] }
   0xf   :  { %173 = vmatpush.xpose.msra.mxu3 %v57_v7  ;;  %87 = vmatpush.xpose.msra.mxu1 %v57_v7  ;;  %v48_v25 = vld [vmem:[%s347_s1 + $0x98] sm:$0xff]  ;;  %v47_v27 = vld [vmem:[%s347_s1 + $0x90] sm:$0xff]  ;;  %v30_v28 = vld [vmem:[%s347_s1 + $0x8] sm:$0xff] }
  0x10   :  { %v46_v29 = vld [vmem:[%s347_s1 + $0x88] sm:$0xff]  ;;  %v29_v30 = vld [vmem:[%s347_s1] sm:$0xff] }
  0x11   :  { %v45_v31 = vld [vmem:[%s347_s1 + $0x80] sm:$0xff]  ;;  %v28_v32 = vld [vmem:[%s346_s0 + $0x8] sm:$0xff] }
  0x12   :  { %158 = vmatpush.xpose.msra.mxu2 %v40_v8  ;;  %65 = vmatpush.xpose.msra.mxu0 %v40_v8  ;;  %v27_v33 = vld [vmem:[%s346_s0] sm:$0xff]  ;;  %s142_s0 = sshll.u32 %s349_s3, 4  ;;  %s143_s0 = int_to_ptr.hbm [resolvable:$true] %s142_s0 }
  0x13   :  { %174 = vmatpush.xpose.msra.mxu3 %v56_v9  ;;  %88 = vmatpush.xpose.msra.mxu1 %v56_v9  ;;  %v122_v34 = vld [vmem:[%s348_s2] sm:$0x3]  ;;  %s216_s2 = smov 256  }
  0x14   :  { %v124_v35 = vperm.slane %v122_v34, 0  ;;  %v125_v36 = vperm.slane %v122_v34, 1 }
  0x16   :  { %159 = vmatpush.xpose.msra.mxu2 %v39_v10  ;;  %66 = vmatpush.xpose.msra.mxu0 %v39_v10 }
  0x17   :  { %175 = vmatpush.xpose.msra.mxu3 %v55_v11  ;;  %89 = vmatpush.xpose.msra.mxu1 %v55_v11 }
  0x1a   :  { %160 = vmatpush.xpose.msra.mxu2 %v38_v12  ;;  %67 = vmatpush.xpose.msra.mxu0 %v38_v12 }
  0x1b   :  { %176 = vmatpush.xpose.msra.mxu3 %v54_v13  ;;  %90 = vmatpush.xpose.msra.mxu1 %v54_v13 }
  0x1e   :  { %161 = vmatpush.xpose.msra.mxu2 %v37_v14  ;;  %68 = vmatpush.xpose.msra.mxu0 %v37_v14 }
  0x1f   :  { %177 = vmatpush.xpose.msra.mxu3 %v53_v15  ;;  %91 = vmatpush.xpose.msra.mxu1 %v53_v15 }
  0x22   :  { %162 = vmatpush.xpose.msra.mxu2 %v36_v16  ;;  %69 = vmatpush.xpose.msra.mxu0 %v36_v16 }
  0x23   :  { %178 = vmatpush.xpose.msra.mxu3 %v52_v17  ;;  %92 = vmatpush.xpose.msra.mxu1 %v52_v17 }
  0x26   :  { %163 = vmatpush.xpose.msra.mxu2 %v35_v18  ;;  %70 = vmatpush.xpose.msra.mxu0 %v35_v18 }
  0x27   :  { %179 = vmatpush.xpose.msra.mxu3 %v51_v19  ;;  %93 = vmatpush.xpose.msra.mxu1 %v51_v19 }
  0x2a   :  { %164 = vmatpush.xpose.msra.mxu2 %v34_v20  ;;  %71 = vmatpush.xpose.msra.mxu0 %v34_v20 }
  0x2b   :  { %180 = vmatpush.xpose.msra.mxu3 %v50_v21  ;;  %94 = vmatpush.xpose.msra.mxu1 %v50_v21 }
  0x2e   :  { %165 = vmatpush.xpose.msra.mxu2 %v33_v22  ;;  %72 = vmatpush.xpose.msra.mxu0 %v33_v22 }
  0x2f   :  { %181 = vmatpush.xpose.msra.mxu3 %v49_v23  ;;  %95 = vmatpush.xpose.msra.mxu1 %v49_v23 }
  0x32   :  { %166 = vmatpush.xpose.msra.mxu2 %v32_v24  ;;  %73 = vmatpush.xpose.msra.mxu0 %v32_v24 }
  0x33   :  { %182 = vmatpush.xpose.msra.mxu3 %v48_v25  ;;  %96 = vmatpush.xpose.msra.mxu1 %v48_v25 }
  0x36   :  { %167 = vmatpush.xpose.msra.mxu2 %v31_v26  ;;  %74 = vmatpush.xpose.msra.mxu0 %v31_v26 }
  0x37   :  { %183 = vmatpush.xpose.msra.mxu3 %v47_v27  ;;  %97 = vmatpush.xpose.msra.mxu1 %v47_v27 }
  0x3a   :  { %168 = vmatpush.xpose.msra.mxu2 %v30_v28  ;;  %75 = vmatpush.xpose.msra.mxu0 %v30_v28 }
  0x3b   :  { %184 = vmatpush.xpose.msra.mxu3 %v46_v29  ;;  %98 = vmatpush.xpose.msra.mxu1 %v46_v29 }
  0x3e   :  { %169 = vmatpush.xpose.msra.mxu2 %v29_v30  ;;  %76 = vmatpush.xpose.msra.mxu0 %v29_v30 }
  0x3f   :  { %185 = vmatpush.xpose.msra.mxu3 %v45_v31  ;;  %99 = vmatpush.xpose.msra.mxu1 %v45_v31 }
  0x41   :  { %80 = vmatmul.f32.vlgmr.msra.gmra.mxu2 %v28_v32  ;;  %77 = vmatmul.f32.vlgmr.msra.gmra.mxu0 %v27_v33 }
  0x42   :  { %103 = vmatmul.f32.vlgmr.msra.gmra.mxu3 %v28_v32  ;;  %100 = vmatmul.f32.vlgmr.msra.gmra.mxu1 %v27_v33 }
  0xbe   :  { %v78_v37 = vpop.f32.mrf.mxu0 }
  0xbf   :  { %v101_v38 = vpop.f32.mrf.mxu1  ;;  %v128_v39 = vadd.f32 %v124_v35, %v78_v37 }
  0xc0   :  { %v129_v40 = vadd.f32 %v125_v36, %v101_v38 }
  0xc1   :  { %132 = vst [vmem:[#allocation3] sm:$0xff] %v128_v39 }
  0xc2   :  { %133 = vst [vmem:[#allocation3 + $0x8] sm:$0xff] %v129_v40 }
  0xc4   :  { %v81_v41 = vpop.f32.mrf.mxu2 }
  0xc5   :  { %v104_v42 = vpop.f32.mrf.mxu3  ;;  %v130_v43 = vadd.f32 %v124_v35, %v81_v41 }
  0xc6   :  { %v131_v44 = vadd.f32 %v125_v36, %v104_v42 }
  0xc7   :  { %134 = vst [vmem:[#allocation3 + $0x10] sm:$0xff] %v130_v43 }
  0xc8   :  { %135 = vst [vmem:[#allocation3 + $0x18] sm:$0xff] %v131_v44 }
  0xc9   :  { %148 = dma.vmem_to_hbm [thread:$0]  %s141_s28, 512, %s143_s0, [#allocation4], %s216_s2, %s216_s2, %s217_s4  }
  0xca   :  { %213 = dma.done.wait [#allocation4], 512  }
  0xcb   :  { %214 = vsyncadd [#allocation4], 4294966784 }
  0xcc   :  { %153 = vsyncpa [#allocation4], 1 }

</bundles_post_ra>
